<compile_context>
chip_gen: v7x
topology: tpu7x:2x2x1
jax: 0.10.0
libtpu: 0.0.40
codegen_flags: <defaults>
</compile_context>

<pallas_src>
import functools

import jax
import jax.numpy as jnp
import numpy as np
from jax.experimental import pallas as pl
from jax.experimental.pallas import tpu as pltpu


# ------------------------------------------------------------------------ fused kernel
def fused_video_conv_kernel(x_ref, ws_ref, bs_ref, wt_ref, bt_ref, o_ref):
    # x_ref : (f, h+2, w*cin)    h-padded input frames, (w, cin) folded into lanes
    # ws_ref: (3, w*cin, w*cout) banded spatial weights (kw & cin folded into K)
    # bs_ref: (1, w*cout)        spatial bias tiled over w
    # wt_ref: (3, w*cout, w*cout) block-diagonal kron(I_w, Wt[k]) temporal weights
    # bt_ref: (1, w*cout)        temporal bias tiled over w
    # o_ref : (f, h, w*cout)     lane-dense output
    f, hp, wic = x_ref.shape
    h = hp - 2
    wc = o_ref.shape[-1]

    # ---- spatial 3x3 conv: three big-M matmuls (M = f*h).  kh taps are row-shifted
    #      loads of the h-padded block; kw & cin live inside the banded K dimension.
    z = jnp.dot(x_ref[:, 0:h, :].reshape(f * h, wic), ws_ref[0],
                preferred_element_type=jnp.float32)
    z = z + jnp.dot(x_ref[:, 1:h + 1, :].reshape(f * h, wic), ws_ref[1],
                    preferred_element_type=jnp.float32)
    z = z + jnp.dot(x_ref[:, 2:h + 2, :].reshape(f * h, wic), ws_ref[2],
                    preferred_element_type=jnp.float32)
    z = z + bs_ref[...]                                         # (f*h, wc) f32

    # ---- temporal k=3 conv on the folded layout: three big-M matmuls; the t-1 / t+1
    #      taps become frame-aligned slice adds + three region stores (no concat/zeros).
    zc = z.astype(x_ref.dtype)
    t0 = jnp.dot(zc, wt_ref[0], preferred_element_type=jnp.float32)
    t1 = jnp.dot(zc, wt_ref[1], preferred_element_type=jnp.float32)
    t2 = jnp.dot(zc, wt_ref[2], preferred_element_type=jnp.float32)

    res = (t1 + bt_ref[...]).reshape(f, h, wc)
    t0 = t0.reshape(f, h, wc)
    t2 = t2.reshape(f, h, wc)
    if f == 1:
        o_ref[0] = res[0].astype(o_ref.dtype)
    else:
        o_ref[0] = (res[0] + t2[1]).astype(o_ref.dtype)                       # no t-1 tap
        o_ref[f - 1] = (res[f - 1] + t0[f - 2]).astype(o_ref.dtype)           # no t+1 tap
        if f > 2:
            o_ref[1:f - 1] = (res[1:f - 1] + t0[0:f - 2] + t2[2:f]).astype(o_ref.dtype)


# ------------------------------------------------------------------------ weight prep
def _banded_spatial_weight(w_spatial, w):
    """(3, 3, cin, cout) -> (3, w*cin, w*cout): unpadded-w band.

    band[kh][iw*cin + c, ow*cout + d] = W[kh, kw, c, d] with iw = ow + kw - 1; taps that
    fall outside [0, w) are dropped, which is exactly 'same' zero padding in w."""
    _, _, cin, cout = w_spatial.shape
    bands = []
    for kh in range(3):
        band = jnp.zeros((w * cin, w * cout), w_spatial.dtype)
        for kw in range(3):
            shift = jnp.eye(w, w, k=1 - kw, dtype=w_spatial.dtype)   # shift[iw, ow]
            band = band + jnp.kron(shift, w_spatial[kh, kw])
        bands.append(band)
    return jnp.stack(bands)


def _blockdiag_temporal_weight(w_temporal, w):
    """(3, c, c) -> (3, w*c, w*c) = kron(I_w, Wt[k]) so the temporal conv contracts the
    folded lane dim directly (dense 128-lane matmuls, no per-pixel relayout)."""
    eye = jnp.eye(w, dtype=w_temporal.dtype)
    return jnp.stack([jnp.kron(eye, w_temporal[k]) for k in range(3)])


# ------------------------------------------------------------------------ VMEM budget
@functools.lru_cache(maxsize=1)
def _vmem_cap_bytes():
    try:
        phys = int(pltpu.get_tpu_info().vmem_capacity_bytes)
    except Exception:
        phys = 64 * 2 ** 20                       # conservative (v7x-sized) fallback
    # leave headroom for compiler scratch: v7x(64MiB)->40MiB, v5e/v6e(128MiB)->104MiB
    return max(32 * 2 ** 20, phys - 24 * 2 ** 20)


# ------------------------------------------------------------------------ wrapper
def video_conv_2d_plus_1d(video, w_spatial, b_spatial, w_temporal, b_temporal,
                          compute_dtype=None):
    """video: (b, f, cin, h, w) -> (b, f, cout, h, w) (PyTorch convention)."""
    return _video_conv_impl(video, w_spatial, b_spatial, w_temporal, b_temporal,
                            compute_dtype=compute_dtype, vmem_cap=_vmem_cap_bytes())


@functools.partial(jax.jit, static_argnames=("compute_dtype", "vmem_cap"))
def _video_conv_impl(video, w_spatial, b_spatial, w_temporal, b_temporal,
                     *, compute_dtype, vmem_cap):
    b, f, cin, h, w = video.shape
    cout = w_spatial.shape[-1]
    wic = w * cin                 # folded (width, cin) lane width of the input
    wc = w * cout                 # folded (width, cout) lane width of the output
    out_dtype = video.dtype

    if compute_dtype is not None:                 # e.g. jnp.bfloat16 on v6e / v7x
        video = video.astype(compute_dtype)
        w_spatial = w_spatial.astype(compute_dtype)
        w_temporal = w_temporal.astype(compute_dtype)

    # layout prep: NCHW -> NHWC fold of (w, cin) into lanes; pad h only (the unpadded-w
    # banded weight handles the left/right edges, so no w pad pass is needed).
    x = video.reshape(b * f, cin, h, w).transpose(0, 2, 3, 1)      # (b*f, h, w, cin)
    x = x.reshape(b, f, h, wic)
    x = jnp.pad(x, ((0, 0), (0, 0), (1, 1), (0, 0)))               # (b, f, h+2, wic)

    ws = _banded_spatial_weight(w_spatial, w)                      # (3, wic, wc)
    bs = jnp.tile(b_spatial.astype(jnp.float32), w).reshape(1, wc)
    wt = _blockdiag_temporal_weight(w_temporal, w)                 # (3, wc, wc)
    bt = jnp.tile(b_temporal.astype(jnp.float32), w).reshape(1, wc)

    # generation-aware VMEM limit: double-buffered in/out blocks + resident weights.
    isz = jnp.dtype(x.dtype).itemsize
    need = (2 * (f * (h + 2) * wic + f * h * wc) * isz
            + (3 * wic * wc + 3 * wc * wc) * isz + 2 * wc * 4 + (4 << 20))
    vmem_limit = int(min(vmem_cap, max(need, 16 << 20)))

    o = pl.pallas_call(
        fused_video_conv_kernel,
        out_shape=jax.ShapeDtypeStruct((b, f, h, wc), out_dtype),
        grid=(b,),
        in_specs=[
            pl.BlockSpec((None, f, h + 2, wic), lambda bi: (bi, 0, 0, 0)),
            pl.BlockSpec((3, wic, wc), lambda bi: (0, 0, 0)),
            pl.BlockSpec((1, wc), lambda bi: (0, 0)),
            pl.BlockSpec((3, wc, wc), lambda bi: (0, 0, 0)),
            pl.BlockSpec((1, wc), lambda bi: (0, 0)),
        ],
        out_specs=pl.BlockSpec((None, f, h, wc), lambda bi: (bi, 0, 0, 0)),
        compiler_params=pltpu.CompilerParams(
            dimension_semantics=("parallel",),
            vmem_limit_bytes=vmem_limit),
    )(x, ws, bs, wt, bt)

    # back to the PyTorch output convention (b, f, cout, h, w)
    return o.reshape(b, f, h, w, cout).transpose(0, 1, 4, 2, 3)


# ------------------------------------------------------------------------ reference
def ref_video_conv(video, w_spatial, b_spatial, w_temporal, b_temporal):
    b, f, cin, h, w = video.shape
    cout = w_spatial.shape[-1]
    x = video.reshape(b * f, cin, h, w).transpose(0, 2, 3, 1)
    xp = jnp.pad(x, ((0, 0), (1, 1), (1, 1), (0, 0)))
    y = jnp.broadcast_to(b_spatial, (b * f, h, w, cout)).astype(jnp.float32)
    for kh in range(3):
        for kw in range(3):
            y = y + jnp.einsum('nhwc,cd->nhwd',
                               xp[:, kh:kh + h, kw:kw + w, :], w_spatial[kh, kw])
    z = y.reshape(b, f, h, w, cout).transpose(0, 2, 3, 1, 4).reshape(b * h * w, f, cout)
    zp = jnp.pad(z, ((0, 0), (1, 1), (0, 0)))
    o = jnp.broadcast_to(b_temporal, (b * h * w, f, cout)).astype(jnp.float32)
    for k in range(3):
        o = o + jnp.einsum('ntc,cd->ntd', zp[:, k:k + f, :], w_temporal[k])
    return o.reshape(b, h, w, f, cout).transpose(0, 3, 4, 1, 2)


# ------------------------------------------------------------------------ main
if __name__ == "__main__":
    B, F, CIN, H, W = 2, 8, 4, 16, 16
    COUT = 8

    key = jax.random.PRNGKey(0)
    k1, k2, k3, k4, k5 = jax.random.split(key, 5)
    video = jax.random.normal(k1, (B, F, CIN, H, W), jnp.float32)
    # Deterministic synthetic parameters (shapes implied by nn.Conv2d / nn.Conv1d).
    w_spatial = jax.random.normal(k2, (3, 3, CIN, COUT), jnp.float32) * 0.1   # (kh,kw,cin,cout)
    b_spatial = jax.random.normal(k3, (COUT,), jnp.float32) * 0.1
    w_temporal = jax.random.normal(k4, (3, COUT, COUT), jnp.float32) * 0.1    # (k,cin,cout)
    b_temporal = jax.random.normal(k5, (COUT,), jnp.float32) * 0.1

    out = video_conv_2d_plus_1d(video, w_spatial, b_spatial, w_temporal, b_temporal)
    out = jax.block_until_ready(out)
    assert out.shape == (B, F, COUT, H, W), out.shape

    ref = jax.block_until_ready(
        ref_video_conv(video, w_spatial, b_spatial, w_temporal, b_temporal))
    np.testing.assert_allclose(np.asarray(out), np.asarray(ref), rtol=1e-2, atol=1e-2)

    print("KERNEL_OK")
</pallas_src>

<mosaic_0001>
module attributes {stable_mosaic.version = 11 : i64} {
  func.func @fused_video_conv_kernel(%arg0: i32, %arg1: memref<1x8x18x64xf32, #tpu.memory_space<vmem>>, %arg2: memref<3x64x128xf32, #tpu.memory_space<vmem>>, %arg3: memref<1x128xf32, #tpu.memory_space<vmem>>, %arg4: memref<3x128x128xf32, #tpu.memory_space<vmem>>, %arg5: memref<1x128xf32, #tpu.memory_space<vmem>>, %arg6: memref<1x8x16x128xf32, #tpu.memory_space<vmem>>) attributes {dimension_semantics = [#tpu.dimension_semantics<parallel>], iteration_bounds = array<i64: 2>, scalar_prefetch = 0 : i64, scratch_operands = 0 : i64, tpu.core_type = #tpu.core_type<tc>, window_params = [{transform_indices = @transform_0, window_bounds = array<i64: 1, 8, 18, 64>}, {pipeline_mode = #tpu.pipeline_mode<synchronous>, transform_indices = @transform_1, window_bounds = array<i64: 3, 64, 128>}, {pipeline_mode = #tpu.pipeline_mode<synchronous>, transform_indices = @transform_2, window_bounds = array<i64: 1, 128>}, {pipeline_mode = #tpu.pipeline_mode<synchronous>, transform_indices = @transform_3, window_bounds = array<i64: 3, 128, 128>}, {pipeline_mode = #tpu.pipeline_mode<synchronous>, transform_indices = @transform_4, window_bounds = array<i64: 1, 128>}, {transform_indices = @transform_5, window_bounds = array<i64: 1, 8, 16, 128>}]} {
    %c0 = arith.constant 0 : index
    %c0_0 = arith.constant 0 : index
    %c0_1 = arith.constant 0 : index
    %c0_2 = arith.constant 0 : index
    %0 = vector.load %arg1[%c0, %c0_0, %c0_1, %c0_2] : memref<1x8x18x64xf32, #tpu.memory_space<vmem>>, vector<1x8x16x64xf32>
    %1 = vector.shape_cast %0 : vector<1x8x16x64xf32> to vector<8x16x64xf32>
    %2 = vector.shape_cast %1 : vector<8x16x64xf32> to vector<128x64xf32>
    %c0_3 = arith.constant 0 : index
    %c0_4 = arith.constant 0 : index
    %c0_5 = arith.constant 0 : index
    %3 = vector.load %arg2[%c0_3, %c0_4, %c0_5] : memref<3x64x128xf32, #tpu.memory_space<vmem>>, vector<1x64x128xf32>
    %4 = vector.shape_cast %3 : vector<1x64x128xf32> to vector<64x128xf32>
    %cst = arith.constant dense<0.000000e+00> : vector<128x128xf32>
    %5 = tpu.matmul %2, %4, %cst {dimension_numbers = #tpu.dot_dimension_numbers<[1], [0], [0], [1], [0, 0, 1, 1], [], []>} : vector<128x64xf32>, vector<64x128xf32>, vector<128x128xf32> -> vector<128x128xf32>
    %c0_6 = arith.constant 0 : index
    %c0_7 = arith.constant 0 : index
    %c1 = arith.constant 1 : index
    %c0_8 = arith.constant 0 : index
    %6 = vector.load %arg1[%c0_6, %c0_7, %c1, %c0_8] : memref<1x8x18x64xf32, #tpu.memory_space<vmem>>, vector<1x8x16x64xf32>
    %7 = vector.shape_cast %6 : vector<1x8x16x64xf32> to vector<8x16x64xf32>
    %8 = vector.shape_cast %7 : vector<8x16x64xf32> to vector<128x64xf32>
    %c1_9 = arith.constant 1 : index
    %c0_10 = arith.constant 0 : index
    %c0_11 = arith.constant 0 : index
    %9 = vector.load %arg2[%c1_9, %c0_10, %c0_11] : memref<3x64x128xf32, #tpu.memory_space<vmem>>, vector<1x64x128xf32>
    %10 = vector.shape_cast %9 : vector<1x64x128xf32> to vector<64x128xf32>
    %cst_12 = arith.constant dense<0.000000e+00> : vector<128x128xf32>
    %11 = tpu.matmul %8, %10, %cst_12 {dimension_numbers = #tpu.dot_dimension_numbers<[1], [0], [0], [1], [0, 0, 1, 1], [], []>} : vector<128x64xf32>, vector<64x128xf32>, vector<128x128xf32> -> vector<128x128xf32>
    %12 = arith.addf %5, %11 : vector<128x128xf32>
    %c0_13 = arith.constant 0 : index
    %c0_14 = arith.constant 0 : index
    %c2 = arith.constant 2 : index
    %c0_15 = arith.constant 0 : index
    %13 = vector.load %arg1[%c0_13, %c0_14, %c2, %c0_15] : memref<1x8x18x64xf32, #tpu.memory_space<vmem>>, vector<1x8x16x64xf32>
    %14 = vector.shape_cast %13 : vector<1x8x16x64xf32> to vector<8x16x64xf32>
    %15 = vector.shape_cast %14 : vector<8x16x64xf32> to vector<128x64xf32>
    %c2_16 = arith.constant 2 : index
    %c0_17 = arith.constant 0 : index
    %c0_18 = arith.constant 0 : index
    %16 = vector.load %arg2[%c2_16, %c0_17, %c0_18] : memref<3x64x128xf32, #tpu.memory_space<vmem>>, vector<1x64x128xf32>
    %17 = vector.shape_cast %16 : vector<1x64x128xf32> to vector<64x128xf32>
    %cst_19 = arith.constant dense<0.000000e+00> : vector<128x128xf32>
    %18 = tpu.matmul %15, %17, %cst_19 {dimension_numbers = #tpu.dot_dimension_numbers<[1], [0], [0], [1], [0, 0, 1, 1], [], []>} : vector<128x64xf32>, vector<64x128xf32>, vector<128x128xf32> -> vector<128x128xf32>
    %19 = arith.addf %12, %18 : vector<128x128xf32>
    %c0_20 = arith.constant 0 : index
    %c0_21 = arith.constant 0 : index
    %20 = vector.load %arg3[%c0_20, %c0_21] : memref<1x128xf32, #tpu.memory_space<vmem>>, vector<1x128xf32>
    %21 = vector.broadcast %20 : vector<1x128xf32> to vector<128x128xf32>
    %22 = arith.addf %19, %21 : vector<128x128xf32>
    %c0_22 = arith.constant 0 : index
    %c0_23 = arith.constant 0 : index
    %c0_24 = arith.constant 0 : index
    %23 = vector.load %arg4[%c0_22, %c0_23, %c0_24] : memref<3x128x128xf32, #tpu.memory_space<vmem>>, vector<1x128x128xf32>
    %24 = vector.shape_cast %23 : vector<1x128x128xf32> to vector<128x128xf32>
    %cst_25 = arith.constant dense<0.000000e+00> : vector<128x128xf32>
    %25 = tpu.matmul %22, %24, %cst_25 {dimension_numbers = #tpu.dot_dimension_numbers<[1], [0], [0], [1], [0, 0, 1, 1], [], []>} : vector<128x128xf32>, vector<128x128xf32>, vector<128x128xf32> -> vector<128x128xf32>
    %c1_26 = arith.constant 1 : index
    %c0_27 = arith.constant 0 : index
    %c0_28 = arith.constant 0 : index
    %26 = vector.load %arg4[%c1_26, %c0_27, %c0_28] : memref<3x128x128xf32, #tpu.memory_space<vmem>>, vector<1x128x128xf32>
    %27 = vector.shape_cast %26 : vector<1x128x128xf32> to vector<128x128xf32>
    %cst_29 = arith.constant dense<0.000000e+00> : vector<128x128xf32>
    %28 = tpu.matmul %22, %27, %cst_29 {dimension_numbers = #tpu.dot_dimension_numbers<[1], [0], [0], [1], [0, 0, 1, 1], [], []>} : vector<128x128xf32>, vector<128x128xf32>, vector<128x128xf32> -> vector<128x128xf32>
    %c2_30 = arith.constant 2 : index
    %c0_31 = arith.constant 0 : index
    %c0_32 = arith.constant 0 : index
    %29 = vector.load %arg4[%c2_30, %c0_31, %c0_32] : memref<3x128x128xf32, #tpu.memory_space<vmem>>, vector<1x128x128xf32>
    %30 = vector.shape_cast %29 : vector<1x128x128xf32> to vector<128x128xf32>
    %cst_33 = arith.constant dense<0.000000e+00> : vector<128x128xf32>
    %31 = tpu.matmul %22, %30, %cst_33 {dimension_numbers = #tpu.dot_dimension_numbers<[1], [0], [0], [1], [0, 0, 1, 1], [], []>} : vector<128x128xf32>, vector<128x128xf32>, vector<128x128xf32> -> vector<128x128xf32>
    %c0_34 = arith.constant 0 : index
    %c0_35 = arith.constant 0 : index
    %32 = vector.load %arg5[%c0_34, %c0_35] : memref<1x128xf32, #tpu.memory_space<vmem>>, vector<1x128xf32>
    %33 = vector.broadcast %32 : vector<1x128xf32> to vector<128x128xf32>
    %34 = arith.addf %28, %33 : vector<128x128xf32>
    %35 = vector.shape_cast %34 : vector<128x128xf32> to vector<8x16x128xf32>
    %36 = vector.shape_cast %25 : vector<128x128xf32> to vector<8x16x128xf32>
    %37 = vector.shape_cast %31 : vector<128x128xf32> to vector<8x16x128xf32>
    %38 = vector.extract_strided_slice %35 {offsets = [0, 0, 0], sizes = [1, 16, 128], strides = [1, 1, 1]} : vector<8x16x128xf32> to vector<1x16x128xf32>
    %39 = vector.shape_cast %38 : vector<1x16x128xf32> to vector<16x128xf32>
    %40 = vector.extract_strided_slice %37 {offsets = [1, 0, 0], sizes = [1, 16, 128], strides = [1, 1, 1]} : vector<8x16x128xf32> to vector<1x16x128xf32>
    %41 = vector.shape_cast %40 : vector<1x16x128xf32> to vector<16x128xf32>
    %42 = arith.addf %39, %41 : vector<16x128xf32>
    %c0_36 = arith.constant 0 : index
    %c0_37 = arith.constant 0 : index
    %c0_38 = arith.constant 0 : index
    %c0_39 = arith.constant 0 : index
    %43 = vector.load %arg6[%c0_36, %c0_37, %c0_38, %c0_39] : memref<1x8x16x128xf32, #tpu.memory_space<vmem>>, vector<1x1x16x128xf32>
    %44 = vector.shape_cast %43 : vector<1x1x16x128xf32> to vector<16x128xf32>
    %45 = vector.shape_cast %42 : vector<16x128xf32> to vector<1x1x16x128xf32>
    tpu.vector_store %arg6[%c0_36, %c0_37, %c0_38, %c0_39], %45 {strides = array<i32>} : memref<1x8x16x128xf32, #tpu.memory_space<vmem>>, vector<1x1x16x128xf32>,
    %46 = vector.extract_strided_slice %35 {offsets = [7, 0, 0], sizes = [1, 16, 128], strides = [1, 1, 1]} : vector<8x16x128xf32> to vector<1x16x128xf32>
    %47 = vector.shape_cast %46 : vector<1x16x128xf32> to vector<16x128xf32>
    %48 = vector.extract_strided_slice %36 {offsets = [6, 0, 0], sizes = [1, 16, 128], strides = [1, 1, 1]} : vector<8x16x128xf32> to vector<1x16x128xf32>
    %49 = vector.shape_cast %48 : vector<1x16x128xf32> to vector<16x128xf32>
    %50 = arith.addf %47, %49 : vector<16x128xf32>
    %c0_40 = arith.constant 0 : index
    %c7 = arith.constant 7 : index
    %c0_41 = arith.constant 0 : index
    %c0_42 = arith.constant 0 : index
    %51 = vector.load %arg6[%c0_40, %c7, %c0_41, %c0_42] : memref<1x8x16x128xf32, #tpu.memory_space<vmem>>, vector<1x1x16x128xf32>
    %52 = vector.shape_cast %51 : vector<1x1x16x128xf32> to vector<16x128xf32>
    %53 = vector.shape_cast %50 : vector<16x128xf32> to vector<1x1x16x128xf32>
    tpu.vector_store %arg6[%c0_40, %c7, %c0_41, %c0_42], %53 {strides = array<i32>} : memref<1x8x16x128xf32, #tpu.memory_space<vmem>>, vector<1x1x16x128xf32>,
    %54 = vector.extract_strided_slice %35 {offsets = [1, 0, 0], sizes = [6, 16, 128], strides = [1, 1, 1]} : vector<8x16x128xf32> to vector<6x16x128xf32>
    %55 = vector.extract_strided_slice %36 {offsets = [0, 0, 0], sizes = [6, 16, 128], strides = [1, 1, 1]} : vector<8x16x128xf32> to vector<6x16x128xf32>
    %56 = arith.addf %54, %55 : vector<6x16x128xf32>
    %57 = vector.extract_strided_slice %37 {offsets = [2, 0, 0], sizes = [6, 16, 128], strides = [1, 1, 1]} : vector<8x16x128xf32> to vector<6x16x128xf32>
    %58 = arith.addf %56, %57 : vector<6x16x128xf32>
    %c0_43 = arith.constant 0 : index
    %c1_44 = arith.constant 1 : index
    %c0_45 = arith.constant 0 : index
    %c0_46 = arith.constant 0 : index
    %59 = vector.load %arg6[%c0_43, %c1_44, %c0_45, %c0_46] : memref<1x8x16x128xf32, #tpu.memory_space<vmem>>, vector<1x6x16x128xf32>
    %60 = vector.shape_cast %59 : vector<1x6x16x128xf32> to vector<6x16x128xf32>
    %61 = vector.shape_cast %58 : vector<6x16x128xf32> to vector<1x6x16x128xf32>
    tpu.vector_store %arg6[%c0_43, %c1_44, %c0_45, %c0_46], %61 {strides = array<i32>} : memref<1x8x16x128xf32, #tpu.memory_space<vmem>>, vector<1x6x16x128xf32>,
    return
  }
  func.func @transform_0(%arg0: i32) -> (i32, i32, i32, i32) {
    %c0_i32 = arith.constant 0 : i32
    %c0_i32_0 = arith.constant 0 : i32
    %c0_i32_1 = arith.constant 0 : i32
    %c0_i32_2 = arith.constant 0 : i32
    return %arg0, %c0_i32, %c0_i32_0, %c0_i32_1 : i32, i32, i32, i32
  }
  func.func @transform_1(%arg0: i32) -> (i32, i32, i32) {
    %c0_i32 = arith.constant 0 : i32
    %c0_i32_0 = arith.constant 0 : i32
    %c0_i32_1 = arith.constant 0 : i32
    %c0_i32_2 = arith.constant 0 : i32
    return %c0_i32, %c0_i32_0, %c0_i32_1 : i32, i32, i32
  }
  func.func @transform_2(%arg0: i32) -> (i32, i32) {
    %c0_i32 = arith.constant 0 : i32
    %c0_i32_0 = arith.constant 0 : i32
    %c0_i32_1 = arith.constant 0 : i32
    return %c0_i32, %c0_i32_0 : i32, i32
  }
  func.func @transform_3(%arg0: i32) -> (i32, i32, i32) {
    %c0_i32 = arith.constant 0 : i32
    %c0_i32_0 = arith.constant 0 : i32
    %c0_i32_1 = arith.constant 0 : i32
    %c0_i32_2 = arith.constant 0 : i32
    return %c0_i32, %c0_i32_0, %c0_i32_1 : i32, i32, i32
  }
  func.func @transform_4(%arg0: i32) -> (i32, i32) {
    %c0_i32 = arith.constant 0 : i32
    %c0_i32_0 = arith.constant 0 : i32
    %c0_i32_1 = arith.constant 0 : i32
    return %c0_i32, %c0_i32_0 : i32, i32
  }
  func.func @transform_5(%arg0: i32) -> (i32, i32, i32, i32) {
    %c0_i32 = arith.constant 0 : i32
    %c0_i32_0 = arith.constant 0 : i32
    %c0_i32_1 = arith.constant 0 : i32
    %c0_i32_2 = arith.constant 0 : i32
    return %arg0, %c0_i32, %c0_i32_0, %c0_i32_1 : i32, i32, i32, i32
  }
}

</mosaic_0001>

<bundles_post_ra>
// kernel: tile.13
= control target key start
LH: loop header
LB: loop body
LE: loop exit
PB: predicated region body
PF: predicated region fallthrough
CT: control target
= control target key end

     0   :  { %s28_s0 = inlined_call_operand.vmem [shape: f32[8], index: 0, kind: input, shape index: {}]   ;;  %s29_s1 = inlined_call_operand.vmem [shape: f32[16,8], index: 1, kind: output, shape index: {}]  }
   0x1   :  { %v4_v0 = vld [vmem:[%s28_s0] ss:$0 sm:$0xff] }
   0x2   :  { %5 = vst [vmem:[%s29_s1] sm:$0xff] %v4_v0  ;;  %8 = vst [vmem:[%s29_s1 + $0x8] sm:$0xff] %v4_v0 }

// kernel: tile.14
= control target key start
LH: loop header
LB: loop body
LE: loop exit
PB: predicated region body
PF: predicated region fallthrough
CT: control target
= control target key end

     0   :  { %s131_s10 = smov 120   ;;  %s132_s11 = smov 104   ;;  %vm3_vm0 = vcmask 64512   ;;  %vm9_vm1 = vcmask 1048512   ;;  %vm15_vm2 = vcmask 982912   ;;  %vm21_vm3 = vcmask 917312   ;;  %s207_s0 = inlined_call_operand.vmem [shape: f32[16,8], index: 0, kind: input, shape index: {}]   ;;  %s208_s1 = inlined_call_operand.vmem [shape: f32[1,128], index: 1, kind: output, shape index: {}]  }
   0x1   :  { %v101_v0 = vld [vmem:[%s207_s0 + $0xf] sm:$0x1]   ;;  %v103_v1 = vld [vmem:[%s207_s0 + $0xd] sm:$0x1]   ;;  %v102_v2 = vld [vmem:[%s207_s0 + $0xe] sm:$0x1]  }
   0x2   :  { %7 = vrot.lane.b32.xlu0 %v101_v0, %s131_s10  ;;  %19 = vrot.lane.b32.xlu1 %v103_v1, %s132_s11  ;;  %v104_v3 = vld [vmem:[%s207_s0 + $0xc] sm:$0x1]   ;;  %s133_s16 = smov 112   ;;  %s134_s17 = smov 96   ;;  %v105_v4 = vld [vmem:[%s207_s0 + $0xb] sm:$0x1]  }
   0x3   :  { %v106_v5 = vld [vmem:[%s207_s0 + $0xa] sm:$0x1]   ;;  %v2_v6 = vld [vmem:[%s207_s0] sm:$0x1]   ;;  %s135_s24 = smov 88   ;;  %s136_s25 = smov 80  }
   0x4   :  { %4 = vst.msk [vmem:[#allocation0] sm:$0x1] %vm3_vm0, %v2_v6   ;;  %v107_v7 = vld [vmem:[%s207_s0 + $0x9] sm:$0x1]   ;;  %v108_v8 = vld [vmem:[%s207_s0 + $0x8] sm:$0x1]  }
   0x5   :  { %s137_s30 = smov 72   ;;  %s138_s2 = smov 64   ;;  %v109_v9 = vld [vmem:[%s207_s0 + $0x7] sm:$0x1]   ;;  %v110_v10 = vld [vmem:[%s207_s0 + $0x6] sm:$0x1]  }
   0x6   :  { %13 = vrot.lane.b32.xlu0 %v102_v2, %s133_s16  ;;  %25 = vrot.lane.b32.xlu1 %v104_v3, %s134_s17  ;;  %s139_s7 = smov 56   ;;  %s140_s8 = smov 48   ;;  %v111_v11 = vld [vmem:[%s207_s0 + $0x5] sm:$0x1]   ;;  %v112_v12 = vld [vmem:[%s207_s0 + $0x4] sm:$0x1]  }
   0x7   :  { %s141_s13 = smov 40   ;;  %s142_s14 = smov 32   ;;  %v113_v13 = vld [vmem:[%s207_s0 + $0x3] sm:$0x1]   ;;  %v114_v14 = vld [vmem:[%s207_s0 + $0x2] sm:$0x1]  }
   0x8   :  { %s143_s19 = smov 24   ;;  %s144_s20 = smov 16   ;;  %v115_v15 = vld [vmem:[%s207_s0 + $0x1] sm:$0x1]   ;;  %vm27_vm4 = vcmask 851712   ;;  %vm33_vm5 = vcmask 786112  }
   0x9   :  { %s145_s0 = smov 8   ;;  %vm39_vm6 = vcmask 720512   ;;  %vm45_vm7 = vcmask 654912   ;;  %vm51_vm8 = vcmask 589312   ;;  %vm57_vm9 = vcmask 523712  }
   0xa   :  { %31 = vrot.lane.b32.xlu0 %v105_v4, %s135_s24  ;;  %37 = vrot.lane.b32.xlu1 %v106_v5, %s136_s25  ;;  %vm63_vm10 = vcmask 458112   ;;  %vm69_vm11 = vcmask 392512   ;;  %vm75_vm12 = vcmask 326912   ;;  %vm81_vm13 = vcmask 261312  }
   0xb   :  { %vm87_vm14 = vcmask 195712   ;;  %vm93_vm15 = vcmask 130112  }
   0xe   :  { %43 = vrot.lane.b32.xlu0 %v107_v7, %s137_s30  ;;  %49 = vrot.lane.b32.xlu1 %v108_v8, %s138_s2 }
  0x12   :  { %55 = vrot.lane.b32.xlu0 %v109_v9, %s139_s7  ;;  %61 = vrot.lane.b32.xlu1 %v110_v10, %s140_s8 }
  0x16   :  { %67 = vrot.lane.b32.xlu0 %v111_v11, %s141_s13  ;;  %73 = vrot.lane.b32.xlu1 %v112_v12, %s142_s14 }
  0x1a   :  { %79 = vrot.lane.b32.xlu0 %v113_v13, %s143_s19  ;;  %85 = vrot.lane.b32.xlu1 %v114_v14, %s144_s20 }
  0x1e   :  { %91 = vrot.lane.b32.xlu0 %v115_v15, %s145_s0 }
  0x74   :  { %v8_v16 = vpop.permute.xlu0 %7   ;;  %v20_v17 = vpop.permute.xlu1 %19  }
  0x75   :  { %10 = vst.msk [vmem:[#allocation0] sm:$0x1] %vm9_vm1, %v8_v16  }
  0x78   :  { %v14_v18 = vpop.permute.xlu0 %13   ;;  %v26_v19 = vpop.permute.xlu1 %25  }
  0x79   :  { %16 = vst.msk [vmem:[#allocation0] sm:$0x1] %vm15_vm2, %v14_v18  }
  0x7a   :  { %22 = vst.msk [vmem:[#allocation0] sm:$0x1] %vm21_vm3, %v20_v17  }
  0x7b   :  { %28 = vst.msk [vmem:[#allocation0] sm:$0x1] %vm27_vm4, %v26_v19  }
  0x7c   :  { %v32_v20 = vpop.permute.xlu0 %31   ;;  %v38_v21 = vpop.permute.xlu1 %37  }
  0x7d   :  { %34 = vst.msk [vmem:[#allocation0] sm:$0x1] %vm33_vm5, %v32_v20  }
  0x7e   :  { %40 = vst.msk [vmem:[#allocation0] sm:$0x1] %vm39_vm6, %v38_v21  }
  0x80   :  { %v44_v22 = vpop.permute.xlu0 %43   ;;  %v50_v23 = vpop.permute.xlu1 %49  }
  0x81   :  { %46 = vst.msk [vmem:[#allocation0] sm:$0x1] %vm45_vm7, %v44_v22  }
  0x82   :  { %52 = vst.msk [vmem:[#allocation0] sm:$0x1] %vm51_vm8, %v50_v23  }
  0x84   :  { %v56_v24 = vpop.permute.xlu0 %55   ;;  %v62_v25 = vpop.permute.xlu1 %61  }
  0x85   :  { %58 = vst.msk [vmem:[#allocation0] sm:$0x1] %vm57_vm9, %v56_v24  }
  0x86   :  { %64 = vst.msk [vmem:[#allocation0] sm:$0x1] %vm63_vm10, %v62_v25  }
  0x88   :  { %v68_v26 = vpop.permute.xlu0 %67   ;;  %v74_v27 = vpop.permute.xlu1 %73  }
  0x89   :  { %70 = vst.msk [vmem:[#allocation0] sm:$0x1] %vm69_vm11, %v68_v26  }
  0x8a   :  { %76 = vst.msk [vmem:[#allocation0] sm:$0x1] %vm75_vm12, %v74_v27  }
  0x8c   :  { %v80_v28 = vpop.permute.xlu0 %79   ;;  %v86_v29 = vpop.permute.xlu1 %85  }
  0x8d   :  { %82 = vst.msk [vmem:[#allocation0] sm:$0x1] %vm81_vm13, %v80_v28  }
  0x8e   :  { %88 = vst.msk [vmem:[#allocation0] sm:$0x1] %vm87_vm14, %v86_v29  }
  0x90   :  { %v92_v30 = vpop.permute.xlu0 %91  }
  0x91   :  { %94 = vst.msk [vmem:[#allocation0] sm:$0x1] %vm93_vm15, %v92_v30  }
  0x98   :  { %v98_v31 = vld [vmem:[#allocation0] sm:$0x1] }
  0x99   :  { %100 = vst [vmem:[%s208_s1] sm:$0x1] %v98_v31 }

// kernel: _video_conv_impl.1
= control target key start
LH: loop header
LB: loop body
LE: loop exit
PB: predicated region body
PF: predicated region fallthrough
CT: control target
= control target key end

     0   :  { %s2369_s18 = smov 0   ;;  %s2854_s0 = inlined_call_operand.vmem [shape: f32[2,8,18,64], index: 0, kind: input, shape index: {}]   ;;  %s2855_s1 = inlined_call_operand.vmem [shape: f32[3,64,128], index: 1, kind: input, shape index: {}]   ;;  %s2856_s2 = inlined_call_operand.vmem [shape: f32[1,128], index: 2, kind: input, shape index: {}]   ;;  %s2857_s3 = inlined_call_operand.vmem [shape: f32[3,128,128], index: 3, kind: input, shape index: {}]   ;;  %s2858_s4 = inlined_call_operand.vmem [shape: f32[1,128], index: 4, kind: input, shape index: {}]   ;;  %s2859_s5 = inlined_call_operand.vmem [shape: f32[2,8,16,128], index: 5, kind: output, shape index: {}]  }
   0x1 LB: > { %s1507_s19 = sadd.s32 4294967295, %s2337_s18   ;;  %p1511_p0 = scmp.ge.s32.totalorder %s2337_s18, 1  ;;  %s2337_s18 = sphi %s2369_s18, %s15_s18  }
   0x2   : > { %p187_p1 = scmp.lt.s32.totalorder %s2337_s18, 3 }
   0x4   : > { %p188_p2 = pnand %p1511_p0, %p187_p1 }
   0x5   : > { %v1515_v0 = vld [vmem:[%s2855_s1 + $0x40] sm:$0xff] (!%p188_p2)  ;;  %v1516_v1 = vld [vmem:[%s2855_s1 + $0x48] sm:$0xff] (!%p188_p2)  ;;  %v1517_v2 = vld [vmem:[%s2855_s1 + $0x50] sm:$0xff] (!%p188_p2)  ;;  %p215_p3 = scmp.lt.s32.totalorder (!%p188_p2), %s1507_s19, 1  ;;  %vm274_vm0 = vcmask (!%p188_p2), 523264  }
   0x6   : > { %191 = sbr.rel (%p188_p2) target bundleno = 604 (0x25c), region = 40  ;;  %v2086_v3 = vpack.c.bf16 (!%p188_p2), %v1516_v1, %v1515_v0  ;;  %v1518_v4 = vld [vmem:[%s2855_s1 + $0x58] sm:$0xff] (!%p188_p2)  ;;  %v1519_v6 = vld [vmem:[%s2855_s1 + $0x60] sm:$0xff] (!%p188_p2)  ;;  %v1520_v7 = vld [vmem:[%s2855_s1 + $0x68] sm:$0xff] (!%p188_p2) }
   0x7   : > { %v2090_v5 = vpack.c.bf16 (!%p188_p2), %v1518_v4, %v1517_v2  ;;  %v2094_v8 = vpack.c.bf16 (!%p188_p2), %v1520_v7, %v1519_v6  ;;  %v1521_v9 = vld [vmem:[%s2855_s1 + $0x70] sm:$0xff] (!%p188_p2)  ;;  %v1522_v10 = vld [vmem:[%s2855_s1 + $0x78] sm:$0xff] (!%p188_p2)  ;;  %v241_v13 = vld [vmem:[%s2855_s1] sm:$0xff] (!%p188_p2) }
   0x8   : > { %2087 = vmatprep.subr.bf16.mxu0 (!%p188_p2), %v2086_v3  ;;  %v2098_v12 = vpack.c.bf16 (!%p188_p2), %v1522_v10, %v1521_v9  ;;  %v242_v14 = vld [vmem:[%s2855_s1 + $0x8] sm:$0xff] (!%p188_p2)  ;;  %v243_v16 = vld [vmem:[%s2855_s1 + $0x10] sm:$0xff] (!%p188_p2)  ;;  %v244_v17 = vld [vmem:[%s2855_s1 + $0x18] sm:$0xff] (!%p188_p2) }
   0x9   : > { %2089 = vmatpush3.bf16.msra.mxu0 (!%p188_p2), %v2086_v3  ;;  %v2102_v15 = vpack.c.bf16 (!%p188_p2), %v242_v14, %v241_v13  ;;  %v2106_v20 = vpack.c.bf16 (!%p188_p2), %v244_v17, %v243_v16  ;;  %v245_v21 = vld [vmem:[%s2855_s1 + $0x20] sm:$0xff] (!%p188_p2)  ;;  %v246_v22 = vld [vmem:[%s2855_s1 + $0x28] sm:$0xff] (!%p188_p2)  ;;  %v247_v26 = vld [vmem:[%s2855_s1 + $0x30] sm:$0xff] (!%p188_p2) }
   0xa   : > { %2091 = vmatprep.subr.bf16.mxu0 (!%p188_p2), %v2090_v5  ;;  %v2110_v25 = vpack.c.bf16 (!%p188_p2), %v246_v22, %v245_v21  ;;  %v248_v27 = vld [vmem:[%s2855_s1 + $0x38] sm:$0xff] (!%p188_p2)  ;;  %v918_v29 = vld [vmem:[%s2857_s3] sm:$0xff] (!%p188_p2)  ;;  %v919_v30 = vld [vmem:[%s2857_s3 + $0x8] sm:$0xff] (!%p188_p2) }
   0xb   : > { %v2114_v32 = vpack.c.bf16 (!%p188_p2), %v248_v27, %v247_v26  ;;  %v2134_v33 = vpack.c.bf16 (!%p188_p2), %v919_v30, %v918_v29  ;;  %v920_v34 = vld [vmem:[%s2857_s3 + $0x10] sm:$0xff] (!%p188_p2)  ;;  %v921_v35 = vld [vmem:[%s2857_s3 + $0x18] sm:$0xff] (!%p188_p2)  ;;  %v1555_v36 = vld [vmem:[%s2855_s1 + $0x80] sm:$0xff] (!%p188_p2) }
   0xc   : > { %v1556_v37 = vld [vmem:[%s2855_s1 + $0x88] sm:$0xff] (!%p188_p2)  ;;  %v2138_v38 = vpack.c.bf16 (!%p188_p2), %v921_v35, %v920_v34  ;;  %v922_v39 = vld [vmem:[%s2857_s3 + $0x20] sm:$0xff] (!%p188_p2)  ;;  %v924_v45 = vld [vmem:[%s2857_s3 + $0x30] sm:$0xff] (!%p188_p2) }
   0xd   : > { %s2861_s19 = smov (!%p215_p3, %s1507_s19), 1  ;;  %2093 = vmatpush3.bf16.msra.mxu0 %v2090_v5  ;;  %2135 = vmatprep.subr.bf16.mxu1 %v2134_v33  ;;  %v923_v40 = vld [vmem:[%s2857_s3 + $0x28] sm:$0xff]  ;;  %v2118_v43 = vpack.c.bf16 %v1556_v37, %v1555_v36  ;;  %v925_v46 = vld [vmem:[%s2857_s3 + $0x38] sm:$0xff]  ;;  %v926_v50 = vld [vmem:[%s2857_s3 + $0x40] sm:$0xff] }
   0xe   : > { %s2322_s7 = smul.u32 192, %s2861_s19  ;;  %2095 = vmatprep.subr.bf16.mxu0 %v2094_v8  ;;  %2137 = vmatpush3.bf16.msra.mxu1 %v2134_v33  ;;  %v2142_v44 = vpack.c.bf16 %v923_v40, %v922_v39  ;;  %v2146_v49 = vpack.c.bf16 %v925_v46, %v924_v45  ;;  %v927_v51 = vld [vmem:[%s2857_s3 + $0x48] sm:$0xff]  ;;  %v928_v55 = vld [vmem:[%s2857_s3 + $0x50] sm:$0xff]  ;;  %v929_v56 = vld [vmem:[%s2857_s3 + $0x58] sm:$0xff]  ;;  %s1629_s10 = sshll.u32 %s2861_s19, 7 }
   0xf   : > { %2139 = vmatprep.subr.bf16.mxu1 %v2138_v38  ;;  %v2150_v54 = vpack.c.bf16 %v927_v51, %v926_v50  ;;  %v2154_v59 = vpack.c.bf16 %v929_v56, %v928_v55  ;;  %v930_v60 = vld [vmem:[%s2857_s3 + $0x60] sm:$0xff]  ;;  %v931_v61 = vld [vmem:[%s2857_s3 + $0x68] sm:$0xff]  ;;  %v1557_v0 = vld [vmem:[%s2855_s1 + $0x90] sm:$0xff]  ;;  %s2833_s16 = scalar_lea.vmem %s2859_s5, %s1629_s10 }
  0x10   : > { %s2407_s14 = scalar_lea.vmem %s2854_s0, %s2322_s7  ;;  %v1558_v1 = vld [vmem:[%s2855_s1 + $0x98] sm:$0xff]  ;;  %v2158_v2 = vpack.c.bf16 %v931_v61, %v930_v60  ;;  %v1559_v6 = vld [vmem:[%s2855_s1 + $0xa0] sm:$0xff]  ;;  %v1560_v7 = vld [vmem:[%s2855_s1 + $0xa8] sm:$0xff] }
  0x11   : > { %v249_v11 = vld [vmem:[%s2407_s14 + $0x1] sm:$0xff]  ;;  %2097 = vmatpush3.bf16.msra.mxu0 %v2094_v8  ;;  %v250_v18 = vld [vmem:[%s2407_s14 + $0x9] sm:$0xff]  ;;  %v251_v19 = vld [vmem:[%s2407_s14 + $0x19] sm:$0xff]  ;;  %v2122_v5 = vpack.c.bf16 %v1558_v1, %v1557_v0  ;;  %v2126_v10 = vpack.c.bf16 %v1560_v7, %v1559_v6 }
  0x12   : > { %1814 = vmatprep.mubr.msk.f32.mxu0 %vm274_vm0, %v249_v11  ;;  %2099 = vmatprep.subr.bf16.mxu0 %v2098_v12  ;;  %v252_v23 = vld [vmem:[%s2407_s14 + $0x21] sm:$0xff]  ;;  %v253_v24 = vld [vmem:[%s2407_s14 + $0x31] sm:$0xff]  ;;  %v254_v28 = vld [vmem:[%s2407_s14 + $0x39] sm:$0xff] }
  0x13   : > { %v255_v31 = vld [vmem:[%s2407_s14 + $0x49] sm:$0xff]  ;;  %v256_v41 = vld [vmem:[%s2407_s14 + $0x51] sm:$0xff]  ;;  %v257_v42 = vld [vmem:[%s2407_s14 + $0x61] sm:$0xff]  ;;  %2141 = vmatpush3.bf16.msra.mxu1 %v2138_v38 }
  0x14   : > { %v258_v47 = vld [vmem:[%s2407_s14 + $0x69] sm:$0xff]  ;;  %v259_v48 = vld [vmem:[%s2407_s14 + $0x79] sm:$0xff]  ;;  %2143 = vmatprep.subr.bf16.mxu1 %v2142_v44  ;;  %v260_v52 = vld [vmem:[%s2407_s14 + $0x81] sm:$0xff] }
  0x15   : > { %2101 = vmatpush3.bf16.msra.mxu0 %v2098_v12  ;;  %v261_v53 = vld [vmem:[%s2407_s14 + $0x91] sm:$0xff]  ;;  %v262_v57 = vld [vmem:[%s2407_s14 + $0x99] sm:$0xff]  ;;  %v263_v58 = vld [vmem:[%s2407_s14 + $0xa9] sm:$0xff] }
  0x16   : > { %2103 = vmatprep.subr.bf16.mxu0 %v2102_v15  ;;  %v264_v62 = vld [vmem:[%s2407_s14 + $0xb1] sm:$0xff]  ;;  %v225_v63 = vld [vmem:[%s2407_s14] sm:$0xff]  ;;  %v226_v3 = vld [vmem:[%s2407_s14 + $0x8] sm:$0xff] }
  0x17   : > { %2145 = vmatpush3.bf16.msra.mxu1 %v2142_v44  ;;  %v227_v4 = vld [vmem:[%s2407_s14 + $0x18] sm:$0xff]  ;;  %v228_v8 = vld [vmem:[%s2407_s14 + $0x20] sm:$0xff]  ;;  %v229_v9 = vld [vmem:[%s2407_s14 + $0x30] sm:$0xff] }
  0x18   : > { %1815 = vmatmul.mubr.msk.f32.vlgmr.msra.gmra.mrb[0].mxu0 %vm274_vm0, %v250_v18  ;;  %2147 = vmatprep.subr.bf16.mxu1 %v2146_v49  ;;  %v1561_v11 = vld [vmem:[%s2855_s1 + $0xb0] sm:$0xff]  ;;  %v1562_v12 = vld [vmem:[%s2855_s1 + $0xb8] sm:$0xff]  ;;  %v231_v14 = vld [vmem:[%s2407_s14 + $0x48] sm:$0xff] }
  0x19   : > { %2105 = vmatpush3.bf16.msra.mxu0 %v2102_v15  ;;  %1817 = vmatprep.mubr.msk.f32.mxu0 %vm274_vm0, %v251_v19  ;;  %v230_v13 = vld [vmem:[%s2407_s14 + $0x38] sm:$0xff]  ;;  %v2130_v15 = vpack.c.bf16 %v1562_v12, %v1561_v11  ;;  %v1580_v16 = vld [vmem:[%s2857_s3 + $0x80] sm:$0xff]  ;;  %v1581_v17 = vld [vmem:[%s2857_s3 + $0x88] sm:$0xff] }
  0x1a   : > { %2107 = vmatprep.subr.bf16.mxu0 %v2106_v20  ;;  %v232_v18 = vld [vmem:[%s2407_s14 + $0x50] sm:$0xff]  ;;  %v233_v19 = vld [vmem:[%s2407_s14 + $0x60] sm:$0xff]  ;;  %v234_v21 = vld [vmem:[%s2407_s14 + $0x68] sm:$0xff] }
  0x1b   : > { %2149 = vmatpush3.bf16.msra.mxu1 %v2146_v49  ;;  %v235_v22 = vld [vmem:[%s2407_s14 + $0x78] sm:$0xff]  ;;  %v239_v26 = vld [vmem:[%s2407_s14 + $0xa8] sm:$0xff]  ;;  %v240_v27 = vld [vmem:[%s2407_s14 + $0xb0] sm:$0xff] }
  0x1c   : > { %1818 = vmatmul.mubr.msk.f32.gmra.mrb[2].mxu0 %vm274_vm0, %v252_v23  ;;  %2151 = vmatprep.subr.bf16.mxu1 %v2150_v54  ;;  %v236_v23 = vld [vmem:[%s2407_s14 + $0x80] sm:$0xff]  ;;  %v1582_v29 = vld [vmem:[%s2857_s3 + $0x90] sm:$0xff]  ;;  %v1583_v30 = vld [vmem:[%s2857_s3 + $0x98] sm:$0xff] }
  0x1d   : > { %1820 = vmatprep.mubr.msk.f32.mxu0 %vm274_vm0, %v253_v24  ;;  %2109 = vmatpush3.bf16.msra.mxu0 %v2106_v20  ;;  %v2553_v20 = vpack.c.bf16 %v1581_v17, %v1580_v16  ;;  %v237_v24 = vld [vmem:[%s2407_s14 + $0x90] sm:$0xff]  ;;  %v2582_v33 = vpack.c.bf16 %v1583_v30, %v1582_v29  ;;  %v1584_v34 = vld [vmem:[%s2857_s3 + $0xa0] sm:$0xff]  ;;  %v1585_v35 = vld [vmem:[%s2857_s3 + $0xa8] sm:$0xff] }
  0x1e   : > { %2111 = vmatprep.subr.bf16.mxu0 %v2110_v25  ;;  %v664_v36 = vld [vmem:[%s2407_s14 + $0x22] sm:$0xff]  ;;  %v665_v37 = vld [vmem:[%s2407_s14 + $0x32] sm:$0xff]  ;;  %v2596_v38 = vpack.c.bf16 %v1585_v35, %v1584_v34  ;;  %v670_v51 = vld [vmem:[%s2407_s14 + $0x6a] sm:$0xff] }
  0x1f   : > { %2153 = vmatpush3.bf16.msra.mxu1 %v2150_v54  ;;  %v1586_v39 = vld [vmem:[%s2857_s3 + $0xb0] sm:$0xff]  ;;  %v1587_v40 = vld [vmem:[%s2857_s3 + $0xb8] sm:$0xff]  ;;  %v1588_v44 = vld [vmem:[%s2857_s3 + $0xc0] sm:$0xff] }
  0x20   : > { %1821 = vmatmul.mubr.msk.f32.gmra.mrb[4].mxu0 %vm274_vm0, %v254_v28  ;;  %2155 = vmatprep.subr.bf16.mxu1 %v2154_v59  ;;  %v661_v28 = vld [vmem:[%s2407_s14 + $0x2] sm:$0xff]  ;;  %v668_v46 = vld [vmem:[%s2407_s14 + $0x52] sm:$0xff]  ;;  %v675_v60 = vld [vmem:[%s2407_s14 + $0xaa] sm:$0xff] }
  0x21   : > { %1823 = vmatprep.mubr.msk.f32.mxu0 %vm274_vm0, %v255_v31  ;;  %2113 = vmatpush3.bf16.msra.mxu0 %v2110_v25  ;;  %v238_v25 = vld [vmem:[%s2407_s14 + $0x98] sm:$0xff]  ;;  %v662_v31 = vld [vmem:[%s2407_s14 + $0xa] sm:$0xff]  ;;  %v1592_v54 = vld [vmem:[%s2857_s3 + $0xe0] sm:$0xff] }
  0x22   : > { %2115 = vmatprep.subr.bf16.mxu0 %v2114_v32  ;;  %v1589_v45 = vld [vmem:[%s2857_s3 + $0xc8] sm:$0xff]  ;;  %v1590_v49 = vld [vmem:[%s2857_s3 + $0xd0] sm:$0xff]  ;;  %v1591_v50 = vld [vmem:[%s2857_s3 + $0xd8] sm:$0xff] }
  0x23   : > { %2157 = vmatpush3.bf16.msra.mxu1 %v2154_v59  ;;  %v1593_v55 = vld [vmem:[%s2857_s3 + $0xe8] sm:$0xff]  ;;  %v674_v59 = vld [vmem:[%s2407_s14 + $0x9a] sm:$0xff]  ;;  %v676_v61 = vld [vmem:[%s2407_s14 + $0xb2] sm:$0xff] }
  0x24   : > { %1824 = vmatmul.mubr.msk.f32.gmra.mrb[6].mxu0 %vm274_vm0, %v256_v41  ;;  %2159 = vmatprep.subr.bf16.mxu1 %v2158_v2  ;;  %v666_v41 = vld [vmem:[%s2407_s14 + $0x3a] sm:$0xff]  ;;  %v672_v56 = vld [vmem:[%s2407_s14 + $0x82] sm:$0xff]  ;;  %v1594_v0 = vld [vmem:[%s2857_s3 + $0xf0] sm:$0xff] }
  0x25   : > { %1826 = vmatprep.mubr.msk.f32.mxu0 %vm274_vm0, %v257_v42  ;;  %2117 = vmatpush3.bf16.msra.mxu0 %v2114_v32  ;;  %v663_v32 = vld [vmem:[%s2407_s14 + $0x1a] sm:$0xff]  ;;  %v667_v42 = vld [vmem:[%s2407_s14 + $0x4a] sm:$0xff] }
  0x26   : > { %2119 = vmatprep.subr.bf16.mxu0 %v2118_v43  ;;  %v2690_v7 = vld [vmem:[%s2856_s2] ss:$0 sm:$0xff]  ;;  %v1601_v17 = vld [vmem:[%s2857_s3 + $0x128] sm:$0xff] }
  0x27   : > { %2161 = vmatpush3.bf16.msra.mxu1 %v2158_v2  ;;  %v1595_v2 = vld [vmem:[%s2857_s3 + $0xf8] sm:$0xff]  ;;  %v1600_v16 = vld [vmem:[%s2857_s3 + $0x120] sm:$0xff] }
  0x28   : > { %1827 = vmatmul.mubr.msk.f32.gmra.mrb[8].mxu0 %vm274_vm0, %v258_v47  ;;  %v669_v47 = vld [vmem:[%s2407_s14 + $0x62] sm:$0xff] }
  0x29   : > { %1829 = vmatprep.mubr.msk.f32.mxu0 %vm274_vm0, %v259_v48  ;;  %v2624_v48 = vpack.c.bf16 %v1589_v45, %v1588_v44 }
  0x2c   : > { %1830 = vmatmul.mubr.msk.f32.gmra.mrb[10].mxu0 %vm274_vm0, %v260_v52  ;;  %v671_v52 = vld [vmem:[%s2407_s14 + $0x7a] sm:$0xff] }
  0x2d   : > { %1832 = vmatprep.mubr.msk.f32.mxu0 %vm274_vm0, %v261_v53  ;;  %v2638_v53 = vpack.c.bf16 %v1591_v50, %v1590_v49  ;;  %v1608_v49 = vld [vmem:[%s2857_s3 + $0x160] sm:$0xff]  ;;  %v1609_v50 = vld [vmem:[%s2857_s3 + $0x168] sm:$0xff] }
  0x30   : > { %1833 = vmatmul.mubr.msk.f32.gmra.mrb[12].mxu0 %vm274_vm0, %v262_v57  ;;  %v673_v57 = vld [vmem:[%s2407_s14 + $0x92] sm:$0xff] }
  0x31   : > { %1835 = vmatprep.mubr.msk.f32.mxu0 %vm274_vm0, %v263_v58  ;;  %v2652_v58 = vpack.c.bf16 %v1593_v55, %v1592_v54  ;;  %v2190_v55 = vpack.c.bf16 %v1609_v50, %v1608_v49 }
  0x34   : > { %1836 = vmatmul.mubr.msk.f32.gmra.mrb[14].mxu0 %vm274_vm0, %v264_v62  ;;  %v932_v62 = vld [vmem:[%s2857_s3 + $0x70] sm:$0xff] }
  0x35   : > { %1854 = vmatprep.mubr.msk.f32.mxu0 %vm274_vm0, %v225_v63  ;;  %v933_v63 = vld [vmem:[%s2857_s3 + $0x78] sm:$0xff] }
  0x36   : > { %v2162_v1 = vpack.c.bf16 %v933_v63, %v932_v62 }
  0x38   : > { %1855 = vmatmul.mubr.msk.f32.vlgmr.msra.gmra.mrb[0].mxu0 %vm274_vm0, %v226_v3  ;;  %v2677_v3 = vpack.c.bf16 %v1595_v2, %v1594_v0  ;;  %2163 = vmatprep.subr.bf16.mxu1 %v2162_v1 }
  0x39   : > { %2121 = vmatpush3.bf16.msra.mxu0 %v2118_v43  ;;  %1857 = vmatprep.mubr.msk.f32.mxu0 %vm274_vm0, %v227_v4  ;;  %v2610_v43 = vpack.c.bf16 %v1587_v40, %v1586_v39  ;;  %v1596_v4 = vld [vmem:[%s2857_s3 + $0x100] sm:$0xff]  ;;  %v1606_v40 = vld [vmem:[%s2857_s3 + $0x150] sm:$0xff] }
  0x3a   : > { %2123 = vmatprep.subr.bf16.mxu0 %v2122_v5  ;;  %2165 = vmatpush3.bf16.msra.mxu1 %v2162_v1 }
  0x3c   : > { %1858 = vmatmul.mubr.msk.f32.gmra.mrb[2].mxu0 %vm274_vm0, %v228_v8 }
  0x3d   : > { %1860 = vmatprep.mubr.msk.f32.mxu0 %vm274_vm0, %v229_v9  ;;  %2125 = vmatpush3.bf16.msra.mxu0 %v2122_v5  ;;  %v1597_v5 = vld [vmem:[%s2857_s3 + $0x108] sm:$0xff]  ;;  %v1598_v9 = vld [vmem:[%s2857_s3 + $0x110] sm:$0xff] }
  0x3e   : > { %2127 = vmatprep.subr.bf16.mxu0 %v2126_v10  ;;  %v2166_v6 = vpack.c.bf16 %v1597_v5, %v1596_v4 }
  0x40   : > { %1861 = vmatmul.mubr.msk.f32.gmra.mrb[4].mxu0 %vm274_vm0, %v230_v13  ;;  %2167 = vmatprep.subr.bf16.mxu1 %v2166_v6 }
  0x41   : > { %1863 = vmatprep.mubr.msk.f32.mxu0 %vm274_vm0, %v231_v14  ;;  %2129 = vmatpush3.bf16.msra.mxu0 %v2126_v10  ;;  %v1599_v10 = vld [vmem:[%s2857_s3 + $0x118] sm:$0xff] }
  0x42   : > { %2131 = vmatprep.subr.bf16.mxu0 %v2130_v15  ;;  %v2170_v14 = vpack.c.bf16 %v1599_v10, %v1598_v9 }
  0x44   : > { %1864 = vmatmul.mubr.msk.f32.gmra.mrb[6].mxu0 %vm274_vm0, %v232_v18 }
  0x45   : > { %1866 = vmatprep.mubr.msk.f32.mxu0 %vm274_vm0, %v233_v19  ;;  %2133 = vmatpush3.bf16.msra.mxu0 %v2130_v15 }
  0x46   : > { %2199 = vmatprep.subr.bf16.mxu0 %v2553_v20 }
  0x48   : > { %1867 = vmatmul.mubr.msk.f32.gmra.mrb[8].mxu0 %vm274_vm0, %v234_v21 }
  0x49   : > { %1869 = vmatprep.mubr.msk.f32.mxu0 %vm274_vm0, %v235_v22  ;;  %v2174_v22 = vpack.c.bf16 %v1601_v17, %v1600_v16 }
  0x4c   : > { %1870 = vmatmul.mubr.msk.f32.gmra.mrb[10].mxu0 %vm274_vm0, %v236_v23 }
  0x4d   : > { %1872 = vmatprep.mubr.msk.f32.mxu0 %vm274_vm0, %v237_v24  ;;  %v1602_v24 = vld [vmem:[%s2857_s3 + $0x130] sm:$0xff] }
  0x50   : > { %1873 = vmatmul.mubr.msk.f32.gmra.mrb[12].mxu0 %vm274_vm0, %v238_v25  ;;  %v1603_v25 = vld [vmem:[%s2857_s3 + $0x138] sm:$0xff] }
  0x51   : > { %1875 = vmatprep.mubr.msk.f32.mxu0 %vm274_vm0, %v239_v26  ;;  %v2178_v29 = vpack.c.bf16 %v1603_v25, %v1602_v24 }
  0x54   : > { %1876 = vmatmul.mubr.msk.f32.gmra.mrb[14].mxu0 %vm274_vm0, %v240_v27 }
  0x55   : > { %1894 = vmatprep.mubr.msk.f32.mxu0 %vm274_vm0, %v661_v28 }
  0x58   : > { %1895 = vmatmul.mubr.msk.f32.vlgmr.msra.gmra.mrb[0].mxu0 %vm274_vm0, %v662_v31  ;;  %v1604_v31 = vld [vmem:[%s2857_s3 + $0x140] sm:$0xff] }
  0x59   : > { %1897 = vmatprep.mubr.msk.f32.mxu0 %vm274_vm0, %v663_v32  ;;  %2201 = vmatpush3.bf16.msra.mxu0 %v2553_v20  ;;  %v1605_v32 = vld [vmem:[%s2857_s3 + $0x148] sm:$0xff] }
  0x5a   : > { %2203 = vmatprep.subr.bf16.mxu0 %v2582_v33 }
  0x5c   : > { %1898 = vmatmul.mubr.msk.f32.gmra.mrb[2].mxu0 %vm274_vm0, %v664_v36 }
  0x5d   : > { %1900 = vmatprep.mubr.msk.f32.mxu0 %vm274_vm0, %v665_v37  ;;  %2205 = vmatpush3.bf16.msra.mxu0 %v2582_v33  ;;  %v2182_v37 = vpack.c.bf16 %v1605_v32, %v1604_v31 }
  0x5e   : > { %2207 = vmatprep.subr.bf16.mxu0 %v2596_v38 }
  0x60   : > { %1901 = vmatmul.mubr.msk.f32.gmra.mrb[4].mxu0 %vm274_vm0, %v666_v41  ;;  %v1607_v41 = vld [vmem:[%s2857_s3 + $0x158] sm:$0xff] }
  0x61   : > { %1903 = vmatprep.mubr.msk.f32.mxu0 %vm274_vm0, %v667_v42  ;;  %2209 = vmatpush3.bf16.msra.mxu0 %v2596_v38 }
  0x62   : > { %2211 = vmatprep.subr.bf16.mxu0 %v2610_v43 }
  0x64   : > { %1904 = vmatmul.mubr.msk.f32.gmra.mrb[6].mxu0 %vm274_vm0, %v668_v46  ;;  %v2186_v46 = vpack.c.bf16 %v1607_v41, %v1606_v40 }
  0x65   : > { %1906 = vmatprep.mubr.msk.f32.mxu0 %vm274_vm0, %v669_v47  ;;  %2213 = vmatpush3.bf16.msra.mxu0 %v2610_v43 }
  0x66   : > { %2215 = vmatprep.subr.bf16.mxu0 %v2624_v48 }
  0x68   : > { %1907 = vmatmul.mubr.msk.f32.gmra.mrb[8].mxu0 %vm274_vm0, %v670_v51 }
  0x69   : > { %1909 = vmatprep.mubr.msk.f32.mxu0 %vm274_vm0, %v671_v52  ;;  %2217 = vmatpush3.bf16.msra.mxu0 %v2624_v48 }
  0x6a   : > { %2219 = vmatprep.subr.bf16.mxu0 %v2638_v53 }
  0x6c   : > { %1910 = vmatmul.mubr.msk.f32.gmra.mrb[10].mxu0 %vm274_vm0, %v672_v56 }
  0x6d   : > { %1912 = vmatprep.mubr.msk.f32.mxu0 %vm274_vm0, %v673_v57  ;;  %2221 = vmatpush3.bf16.msra.mxu0 %v2638_v53  ;;  %v1610_v57 = vld [vmem:[%s2857_s3 + $0x170] sm:$0xff] }
  0x6e   : > { %2223 = vmatprep.subr.bf16.mxu0 %v2652_v58 }
  0x70   : > { %1913 = vmatmul.mubr.msk.f32.gmra.mrb[12].mxu0 %vm274_vm0, %v674_v59  ;;  %v1611_v59 = vld [vmem:[%s2857_s3 + $0x178] sm:$0xff] }
  0x71   : > { %1915 = vmatprep.mubr.msk.f32.mxu0 %vm274_vm0, %v675_v60  ;;  %2225 = vmatpush3.bf16.msra.mxu0 %v2652_v58  ;;  %v2194_v63 = vpack.c.bf16 %v1611_v59, %v1610_v57 }
  0x72   : > { %2227 = vmatprep.subr.bf16.mxu0 %v2677_v3 }
  0x74   : > { %1916 = vmatmul.mubr.msk.f32.gmra.mrb[14].mxu0 %vm274_vm0, %v676_v61 }
  0x75   : > { %2229 = vmatpush3.bf16.msra.mxu0 %v2677_v3 }
 0x12b   : > { %v1896_v8 = vpop.f32.mrb[0].mxu0 }
 0x12c   : > { %v800_v11 = vpop.f32.mrb[1].mxu0  ;;  %v2702_v13 = vadd.f32 %v1896_v8, %v2690_v7 }
 0x12d   : > { %v2699_v12 = vadd.f32 %v2690_v7, %v800_v11 }
 0x12f   : > { %v1899_v15 = vpop.f32.mrb[2].mxu0  ;;  %1950 = vmatprep.mubr.f32.mxu1 %v2699_v12  ;;  %2062 = vmatprep.mubr.f32.mxu0 %v2699_v12 }
 0x130   : > { %v810_v18 = vpop.f32.mrb[3].mxu0  ;;  %1951 = vmatmul.mubr.f32.vlgmr.msra.gmra.mrb[0].mxu1 %v2702_v13  ;;  %2063 = vmatmul.mubr.f32.vlgmr.msra.gmra.mrb[16].mxu0 %v2702_v13  ;;  %v2718_v21 = vadd.f32 %v1899_v15, %v2690_v7 }
 0x131   : > { %v2715_v19 = vadd.f32 %v2690_v7, %v810_v18  ;;  %2169 = vmatpush3.bf16.msra.mxu1 %v2166_v6  ;;  %v1612_v6 = vld [vmem:[%s2858_s4] ss:$0 sm:$0xff] }
 0x132   : > { %2171 = vmatprep.subr.bf16.mxu1 %v2170_v14 }
 0x133   : > { %v1902_v23 = vpop.f32.mrb[4].mxu0  ;;  %1953 = vmatprep.mubr.f32.mxu1 %v2715_v19  ;;  %2065 = vmatprep.mubr.f32.mxu0 %v2715_v19 }
 0x134   : > { %v820_v26 = vpop.f32.mrb[5].mxu0  ;;  %1954 = vmatmul.mubr.f32.gmra.mrb[2].mxu1 %v2718_v21  ;;  %2066 = vmatmul.mubr.f32.gmra.mrb[18].mxu0 %v2718_v21  ;;  %v2734_v28 = vadd.f32 %v1902_v23, %v2690_v7 }
 0x135   : > { %v2731_v27 = vadd.f32 %v2690_v7, %v820_v26  ;;  %2173 = vmatpush3.bf16.msra.mxu1 %v2170_v14 }
 0x136   : > { %2175 = vmatprep.subr.bf16.mxu1 %v2174_v22 }
 0x137   : > { %v1905_v30 = vpop.f32.mrb[6].mxu0  ;;  %1956 = vmatprep.mubr.f32.mxu1 %v2731_v27 }
 0x138   : > { %v830_v34 = vpop.f32.mrb[7].mxu0  ;;  %1957 = vmatmul.mubr.f32.gmra.mrb[4].mxu1 %v2734_v28  ;;  %v2748_v36 = vadd.f32 %v1905_v30, %v2690_v7 }
 0x139   : > { %v2745_v35 = vadd.f32 %v2690_v7, %v830_v34  ;;  %2177 = vmatpush3.bf16.msra.mxu1 %v2174_v22 }
 0x13a   : > { %2179 = vmatprep.subr.bf16.mxu1 %v2178_v29 }
 0x13b   : > { %v1908_v39 = vpop.f32.mrb[8].mxu0  ;;  %1959 = vmatprep.mubr.f32.mxu1 %v2745_v35 }
 0x13c   : > { %v840_v42 = vpop.f32.mrb[9].mxu0  ;;  %1960 = vmatmul.mubr.f32.gmra.mrb[6].mxu1 %v2748_v36  ;;  %v2762_v45 = vadd.f32 %v1908_v39, %v2690_v7 }
 0x13d   : > { %v2759_v44 = vadd.f32 %v2690_v7, %v840_v42  ;;  %2181 = vmatpush3.bf16.msra.mxu1 %v2178_v29 }
 0x13e   : > { %2183 = vmatprep.subr.bf16.mxu1 %v2182_v37 }
 0x13f   : > { %v1911_v47 = vpop.f32.mrb[10].mxu0  ;;  %1962 = vmatprep.mubr.f32.mxu1 %v2759_v44 }
 0x140   : > { %v850_v51 = vpop.f32.mrb[11].mxu0  ;;  %1963 = vmatmul.mubr.f32.gmra.mrb[8].mxu1 %v2762_v45  ;;  %v2776_v54 = vadd.f32 %v1911_v47, %v2690_v7 }
 0x141   : > { %v2773_v52 = vadd.f32 %v2690_v7, %v850_v51  ;;  %2185 = vmatpush3.bf16.msra.mxu1 %v2182_v37 }
 0x142   : > { %2187 = vmatprep.subr.bf16.mxu1 %v2186_v46 }
 0x143   : > { %v1914_v56 = vpop.f32.mrb[12].mxu0  ;;  %1965 = vmatprep.mubr.f32.mxu1 %v2773_v52 }
 0x144   : > { %v860_v60 = vpop.f32.mrb[13].mxu0  ;;  %1966 = vmatmul.mubr.f32.gmra.mrb[10].mxu1 %v2776_v54  ;;  %v915_v62 = vadd.f32 %v1914_v56, %v2690_v7 }
 0x145   : > { %v914_v61 = vadd.f32 %v2690_v7, %v860_v60  ;;  %2189 = vmatpush3.bf16.msra.mxu1 %v2186_v46 }
 0x146   : > { %2191 = vmatprep.subr.bf16.mxu1 %v2190_v55 }
 0x147   : > { %v1917_v0 = vpop.f32.mrb[14].mxu0  ;;  %1968 = vmatprep.mubr.f32.mxu1 %v914_v61 }
 0x148   : > { %v870_v1 = vpop.f32.mrb[15].mxu0  ;;  %1969 = vmatmul.mubr.f32.gmra.mrb[12].mxu1 %v915_v62  ;;  %v917_v4 = vadd.f32 %v1917_v0, %v2690_v7 }
 0x149   : > { %v916_v2 = vadd.f32 %v2690_v7, %v870_v1  ;;  %2193 = vmatpush3.bf16.msra.mxu1 %v2190_v55 }
 0x14a   : > { %2195 = vmatprep.subr.bf16.mxu1 %v2194_v63 }
 0x14b   : > { %1971 = vmatprep.mubr.f32.mxu1 %v916_v2 }
 0x14c   : > { %1972 = vmatmul.mubr.f32.gmra.mrb[14].mxu1 %v917_v4 }
 0x14d   : > { %2197 = vmatpush3.bf16.msra.mxu1 %v2194_v63  ;;  %2006 = vmatprep.mubr.f32.mxu1 %v2699_v12 }
 0x14e   : > { %2230 = vmatprep.subr.bf16.mxu1 %v2553_v20 }
 0x150   : > { %2007 = vmatmul.mubr.f32.vlgmr.msra.gmra.mrb[16].mxu1 %v2702_v13 }
 0x151   : > { %2009 = vmatprep.mubr.f32.mxu1 %v2715_v19  ;;  %2238 = vmatpush3.bf16.msra.mxu1 %v2553_v20 }
 0x152   : > { %2231 = vmatprep.subr.bf16.mxu1 %v2582_v33 }
 0x154   : > { %2010 = vmatmul.mubr.f32.gmra.mrb[18].mxu1 %v2718_v21 }
 0x155   : > { %2012 = vmatprep.mubr.f32.mxu1 %v2731_v27  ;;  %2239 = vmatpush3.bf16.msra.mxu1 %v2582_v33 }
 0x156   : > { %2232 = vmatprep.subr.bf16.mxu1 %v2596_v38 }
 0x158   : > { %2013 = vmatmul.mubr.f32.gmra.mrb[0].mxu1 %v2734_v28 }
 0x159   : > { %2015 = vmatprep.mubr.f32.mxu1 %v2745_v35  ;;  %2240 = vmatpush3.bf16.msra.mxu1 %v2596_v38 }
 0x15a   : > { %2233 = vmatprep.subr.bf16.mxu1 %v2610_v43 }
 0x15c   : > { %2016 = vmatmul.mubr.f32.gmra.mrb[2].mxu1 %v2748_v36 }
 0x15d   : > { %2018 = vmatprep.mubr.f32.mxu1 %v2759_v44  ;;  %2241 = vmatpush3.bf16.msra.mxu1 %v2610_v43 }
 0x15e   : > { %2234 = vmatprep.subr.bf16.mxu1 %v2624_v48 }
 0x160   : > { %2019 = vmatmul.mubr.f32.gmra.mrb[4].mxu1 %v2762_v45 }
 0x161   : > { %2021 = vmatprep.mubr.f32.mxu1 %v2773_v52  ;;  %2242 = vmatpush3.bf16.msra.mxu1 %v2624_v48 }
 0x162   : > { %2235 = vmatprep.subr.bf16.mxu1 %v2638_v53 }
 0x164   : > { %2022 = vmatmul.mubr.f32.gmra.mrb[6].mxu1 %v2776_v54 }
 0x165   : > { %2024 = vmatprep.mubr.f32.mxu1 %v914_v61  ;;  %2243 = vmatpush3.bf16.msra.mxu1 %v2638_v53 }
 0x166   : > { %2236 = vmatprep.subr.bf16.mxu1 %v2652_v58 }
 0x168   : > { %2025 = vmatmul.mubr.f32.gmra.mrb[8].mxu1 %v915_v62 }
 0x169   : > { %2027 = vmatprep.mubr.f32.mxu1 %v916_v2  ;;  %2244 = vmatpush3.bf16.msra.mxu1 %v2652_v58 }
 0x16a   : > { %2237 = vmatprep.subr.bf16.mxu1 %v2677_v3 }
 0x16c   : > { %2028 = vmatmul.mubr.f32.gmra.mrb[10].mxu1 %v917_v4 }
 0x16d   : > { %2245 = vmatpush3.bf16.msra.mxu1 %v2677_v3  ;;  %2068 = vmatprep.mubr.f32.mxu1 %v2731_v27 }
 0x170   : > { %2069 = vmatmul.mubr.f32.vlgmr.msra.gmra.mrb[2].mxu1 %v2734_v28 }
 0x171   : > { %2071 = vmatprep.mubr.f32.mxu1 %v2745_v35 }
 0x174   : > { %2072 = vmatmul.mubr.f32.gmra.mrb[4].mxu1 %v2748_v36 }
 0x175   : > { %2074 = vmatprep.mubr.f32.mxu1 %v2759_v44 }
 0x178   : > { %2075 = vmatmul.mubr.f32.gmra.mrb[6].mxu1 %v2762_v45 }
 0x179   : > { %2077 = vmatprep.mubr.f32.mxu1 %v2773_v52 }
 0x17c   : > { %2078 = vmatmul.mubr.f32.gmra.mrb[8].mxu1 %v2776_v54 }
 0x17d   : > { %2080 = vmatprep.mubr.f32.mxu1 %v914_v61 }
 0x180   : > { %2081 = vmatmul.mubr.f32.gmra.mrb[10].mxu1 %v915_v62 }
 0x181   : > { %2083 = vmatprep.mubr.f32.mxu1 %v916_v2 }
 0x184   : > { %2084 = vmatmul.mubr.f32.gmra.mrb[12].mxu1 %v917_v4 }
 0x203   : > { %v2064_v20 = vpop.f32.mrb[16].mxu0 }
 0x204   : > { %v1327_v33 = vpop.f32.mrb[17].mxu0 }
 0x207   : > { %v2067_v38 = vpop.f32.mrb[18].mxu0 }
 0x208   : > { %v1337_v43 = vpop.f32.mrb[19].mxu0 }
 0x21f   : > { %v1973_v48 = vpop.f32.mrb[14].mxu1 }
 0x220   : > { %v1070_v53 = vpop.f32.mrb[15].mxu1 }
 0x223   : > { %v2008_v58 = vpop.f32.mrb[16].mxu1 }
 0x224   : > { %v1177_v3 = vpop.f32.mrb[17].mxu1 }
 0x227   : > { %v2011_v5 = vpop.f32.mrb[18].mxu1 }
 0x228   : > { %v2262_v7 = vadd.f32 %v2064_v20, %v2011_v5  ;;  %v1185_v8 = vpop.f32.mrb[19].mxu1 }
 0x229   : > { %v2264_v9 = vadd.f32 %v1327_v33, %v1185_v8 }
 0x22a   : > { %v2263_v10 = vadd.f32 %v2262_v7, %v1612_v6 }
 0x22b   : > { %v2265_v11 = vadd.f32 %v2264_v9, %v1612_v6  ;;  %v2014_v12 = vpop.f32.mrb[0].mxu1 }
 0x22c   : > { %1409 = vst [vmem:[%s2833_s16 + $0x8] sm:$0xff] %v2263_v10  ;;  %v2246_v13 = vadd.f32 %v2014_v12, %v1612_v6  ;;  %v1195_v14 = vpop.f32.mrb[1].mxu1 }
 0x22d   : > { %1408 = vst [vmem:[%s2833_s16] sm:$0xff] %v2265_v11  ;;  %v2248_v15 = vadd.f32 %v1612_v6, %v1195_v14 }
 0x22e   : > { %v2247_v16 = vadd.f32 %v2246_v13, %v2067_v38 }
 0x22f   : > { %v2249_v17 = vadd.f32 %v2248_v15, %v1337_v43 }
 0x230   : > { %1616 = vst [vmem:[%s2833_s16 + $0x18] sm:$0xff] %v2247_v16 }
 0x231   : > { %1615 = vst [vmem:[%s2833_s16 + $0x10] sm:$0xff] %v2249_v17 }
 0x243   : > { %v2070_v18 = vpop.f32.mrb[2].mxu1 }
 0x244   : > { %v1353_v19 = vadd.f32 %v2070_v18, %v1612_v6  ;;  %v1347_v21 = vpop.f32.mrb[3].mxu1 }
 0x245   : > { %v1348_v22 = vadd.f32 %v1612_v6, %v1347_v21 }
 0x246   : > { %1618 = vst [vmem:[%s2833_s16 + $0x28] sm:$0xff] %v1353_v19 }
 0x247   : > { %1617 = vst [vmem:[%s2833_s16 + $0x20] sm:$0xff] %v1348_v22  ;;  %v2073_v23 = vpop.f32.mrb[4].mxu1 }
 0x248   : > { %v1363_v24 = vadd.f32 %v2073_v23, %v1612_v6  ;;  %v1357_v25 = vpop.f32.mrb[5].mxu1 }
 0x249   : > { %v1358_v26 = vadd.f32 %v1612_v6, %v1357_v25 }
 0x24a   : > { %1620 = vst [vmem:[%s2833_s16 + $0x38] sm:$0xff] %v1363_v24 }
 0x24b   : > { %1619 = vst [vmem:[%s2833_s16 + $0x30] sm:$0xff] %v1358_v26  ;;  %v2076_v27 = vpop.f32.mrb[6].mxu1 }
 0x24c   : > { %v1373_v28 = vadd.f32 %v2076_v27, %v1612_v6  ;;  %v1367_v29 = vpop.f32.mrb[7].mxu1 }
 0x24d   : > { %v1368_v30 = vadd.f32 %v1612_v6, %v1367_v29 }
 0x24e   : > { %1622 = vst [vmem:[%s2833_s16 + $0x48] sm:$0xff] %v1373_v28 }
 0x24f   : > { %1621 = vst [vmem:[%s2833_s16 + $0x40] sm:$0xff] %v1368_v30  ;;  %v2079_v31 = vpop.f32.mrb[8].mxu1 }
 0x250   : > { %v1383_v32 = vadd.f32 %v2079_v31, %v1612_v6  ;;  %v1377_v34 = vpop.f32.mrb[9].mxu1 }
 0x251   : > { %v1378_v35 = vadd.f32 %v1612_v6, %v1377_v34 }
 0x252   : > { %1624 = vst [vmem:[%s2833_s16 + $0x58] sm:$0xff] %v1383_v32 }
 0x253   : > { %1623 = vst [vmem:[%s2833_s16 + $0x50] sm:$0xff] %v1378_v35  ;;  %v2082_v36 = vpop.f32.mrb[10].mxu1 }
 0x254   : > { %v1393_v37 = vadd.f32 %v2082_v36, %v1612_v6  ;;  %v1387_v39 = vpop.f32.mrb[11].mxu1 }
 0x255   : > { %v1388_v40 = vadd.f32 %v1612_v6, %v1387_v39 }
 0x256   : > { %1626 = vst [vmem:[%s2833_s16 + $0x68] sm:$0xff] %v1393_v37 }
 0x257   : > { %1625 = vst [vmem:[%s2833_s16 + $0x60] sm:$0xff] %v1388_v40  ;;  %v2085_v41 = vpop.f32.mrb[12].mxu1 }
 0x258   : > { %v1403_v42 = vadd.f32 %v2085_v41, %v1612_v6  ;;  %v1397_v44 = vpop.f32.mrb[13].mxu1 }
 0x259   : > { %v1398_v45 = vadd.f32 %v1612_v6, %v1397_v44 }
 0x25a   : > { %1614 = vst [vmem:[%s2833_s16 + $0x78] sm:$0xff] %v1403_v42 }
 0x25b   : > { %1613 = vst [vmem:[%s2833_s16 + $0x70] sm:$0xff] %v1398_v45 }
 0x25c PF: > { %s15_s18 = sadd.s32 1, %s2337_s18  }
 0x25d   : > { %p12_p4 = scmp.ge.s32.totalorder %s15_s18, 4  }
 0x25f   :  { %14 = sbr.rel (!%p12_p4) target bundleno = 1 (0x1), region = 76 }

</bundles_post_ra>
